<compile_context>
chip_gen: v7x
topology: tpu7x:2x2x1
jax: 0.10.0
libtpu: 0.0.40
codegen_flags: <defaults>
</compile_context>

<pallas_src>
import functools

import jax
import jax.numpy as jnp
from jax.experimental import pallas as pl
from jax.experimental.pallas import tpu as pltpu

# OGB / torch_geometric e_map edge-feature cardinalities:
#   bond_type: 5, stereo: 6, is_conjugated: 2
EDGE_FEAT_DIMS = (5, 6, 2)
NHID = 32
VOCAB = sum(EDGE_FEAT_DIMS)            # 13
ROWS_PER_COPY = 16                     # each table copy padded to 16 rows (mult of 8)
OFFSETS = (0, 5, 11)                   # cumulative row offsets per feature
_BITS = 10                             # bits per packed column id (cols < 1024)


def _round_up(x, m):
    return ((x + m - 1) // m) * m


def _bond_encoder_kernel(attr_ref, table_ref, out_ref, *, n_feat, pack):
    # attr_ref : (tile_g, pack)                 int32  (each int32 = n_feat packed 10-bit cols)
    # table_ref: (pack*ROWS_PER_COPY, pack*nhid) f32   (block-diagonal concatenated tables)
    # out_ref  : (tile_g, pack*nhid)            f32    (lane-dense: pack*nhid == 128)
    packed = attr_ref[...]
    table = table_ref[...]
    tile_g = packed.shape[0]
    width = table.shape[0]                                 # pack * ROWS_PER_COPY

    lane_iota = jax.lax.broadcasted_iota(jnp.int32, (tile_g, width), 1)
    mask_val = (1 << _BITS) - 1

    # Fused multi-hot: OR of all equality masks (hit columns are disjoint
    # across slots/features, except sentinel hits which land on zero rows).
    hit = None
    for f in range(n_feat):                                # n_feat, pack small & static
        cols_f = (packed >> (_BITS * f)) & mask_val        # (tile_g, pack)
        for j in range(pack):
            m = lane_iota == cols_f[:, j:j + 1]
            hit = m if hit is None else (hit | m)
    multi_hot = hit.astype(jnp.float32)                    # (tile_g, pack*ROWS_PER_COPY)

    out_ref[...] = jnp.dot(
        multi_hot, table, preferred_element_type=jnp.float32
    ).astype(out_ref.dtype)


def bond_encoder(edge_attr, packed_table, *, tile_e=2048):
    """edge_attr: int [E, F]; packed_table: f32 [pack*16, pack*nhid] -> f32 [E, nhid]."""
    E, F = edge_attr.shape
    W, PH = packed_table.shape
    pack = W // ROWS_PER_COPY
    nhid = PH // pack
    assert F == len(EDGE_FEAT_DIMS)
    assert F * _BITS <= 31, "bit-packing assumes <= 3 ten-bit fields per int32"

    dims = jnp.array(EDGE_FEAT_DIMS, jnp.int32)
    offs = jnp.array(OFFSETS, jnp.int32)

    # Column index per (edge, feature) inside the block-diagonal table.
    # Clamp (matches jnp.take semantics) so out-of-range attrs can't leak
    # into a neighbouring feature's rows.
    idx = jnp.clip(edge_attr.astype(jnp.int32), 0, dims[None, :] - 1)
    slot = (jnp.arange(E, dtype=jnp.int32) % pack) * ROWS_PER_COPY
    cols = idx + offs[None, :] + slot[:, None]             # (E, F), each < pack*16

    packed = jnp.zeros((E,), jnp.int32)
    for f in range(F):
        packed = packed | (cols[:, f] << (_BITS * f))

    # Sentinel for padded edges: every field points at row VOCAB (a zero row
    # of copy 0), so padded lanes contribute exactly zero to the group's row.
    sentinel = 0
    for f in range(F):
        sentinel |= VOCAB << (_BITS * f)

    n_groups = _round_up(E, pack) // pack
    # Edge tile -> group tile; keep it a multiple of 8 sublanes and don't
    # blow past what the problem actually needs.
    tile_g = max(8, (max(tile_e, 8 * pack) // pack) // 8 * 8)
    tile_g = min(tile_g, _round_up(n_groups, 8))
    g_pad = _round_up(n_groups, tile_g)
    e_pad = g_pad * pack

    packed = jnp.pad(packed, (0, e_pad - E), constant_values=sentinel)
    packed = packed.reshape(g_pad, pack)                   # (groups, edges-per-group)

    kernel = functools.partial(_bond_encoder_kernel, n_feat=F, pack=pack)
    out = pl.pallas_call(
        kernel,
        out_shape=jax.ShapeDtypeStruct((g_pad, pack * nhid), jnp.float32),
        grid_spec=pltpu.PrefetchScalarGridSpec(
            num_scalar_prefetch=0,
            grid=(g_pad // tile_g,),
            in_specs=[
                pl.BlockSpec((tile_g, pack), lambda i: (i, 0)),   # packed attrs
                pl.BlockSpec((W, PH), lambda i: (0, 0)),          # full table (resident)
            ],
            out_specs=pl.BlockSpec((tile_g, pack * nhid), lambda i: (i, 0)),
        ),
        compiler_params=pltpu.CompilerParams(
            dimension_semantics=("parallel",),
        ),
    )(packed, packed_table)

    # (g_pad, pack*nhid) -> (g_pad*pack, nhid): contiguous (free) reshape;
    # row g, cols [j*nhid:(j+1)*nhid] is exactly edge g*pack + j.
    return out.reshape(g_pad * pack, nhid)[:E]


def _xavier_uniform(key, shape):
    fan_in, fan_out = shape
    bound = (6.0 / (fan_in + fan_out)) ** 0.5
    return jax.random.uniform(key, shape, jnp.float32, -bound, bound)


def make_params(key, nhid):
    """Per-feature tables + the block-diagonal packed table fed to the kernel."""
    keys = jax.random.split(key, len(EDGE_FEAT_DIMS))
    tables = [_xavier_uniform(k, (d, nhid)) for k, d in zip(keys, EDGE_FEAT_DIMS)]
    base = jnp.concatenate(tables, axis=0)                        # [VOCAB, nhid]
    base = jnp.pad(base, ((0, ROWS_PER_COPY - VOCAB), (0, 0)))    # [16, nhid]

    pack = 128 // nhid if (nhid <= 128 and 128 % nhid == 0) else 1
    packed_table = jnp.zeros((pack * ROWS_PER_COPY, pack * nhid), jnp.float32)
    for j in range(pack):
        packed_table = packed_table.at[
            j * ROWS_PER_COPY:(j + 1) * ROWS_PER_COPY, j * nhid:(j + 1) * nhid
        ].set(base)
    return packed_table, tables


def reference(edge_attr, tables):
    out = 0
    for f, tab in enumerate(tables):
        out = out + jnp.take(tab, edge_attr[:, f], axis=0)
    return out


if __name__ == "__main__":
    key = jax.random.PRNGKey(0)
    k_param, k_attr = jax.random.split(key)

    packed_table, tables = make_params(k_param, NHID)

    def make_edge_attr(k, n_edges):
        cols = []
        for f, dim in enumerate(EDGE_FEAT_DIMS):
            cols.append(
                jax.random.randint(jax.random.fold_in(k, f), (n_edges, 1), 0, dim, jnp.int32)
            )
        return jnp.concatenate(cols, axis=1)

    # Small deterministic case: E=16 edges, F=3 features.
    edge_attr = make_edge_attr(k_attr, 16)
    out = jax.block_until_ready(bond_encoder(edge_attr, packed_table))
    ref = reference(edge_attr, tables)
    assert out.shape == (16, NHID)
    assert jnp.allclose(out, ref, atol=1e-5, rtol=1e-5)

    # Non-multiple-of-tile case to exercise padding + multi-step grid.
    edge_attr2 = make_edge_attr(jax.random.fold_in(k_attr, 99), 1000)
    out2 = jax.block_until_ready(bond_encoder(edge_attr2, packed_table, tile_e=512))
    ref2 = reference(edge_attr2, tables)
    assert out2.shape == (1000, NHID)
    assert jnp.allclose(out2, ref2, atol=1e-5, rtol=1e-5)

    print("KERNEL_OK")
</pallas_src>

<mosaic_0001>
module attributes {stable_mosaic.version = 11 : i64} {
  func.func @_bond_encoder_kernel(%arg0: i32, %arg1: memref<8x4xi32, #tpu.memory_space<vmem>>, %arg2: memref<64x128xf32, #tpu.memory_space<vmem>>, %arg3: memref<8x128xf32, #tpu.memory_space<vmem>>) attributes {dimension_semantics = [#tpu.dimension_semantics<parallel>], iteration_bounds = array<i64: 1>, scalar_prefetch = 0 : i64, scratch_operands = 0 : i64, tpu.core_type = #tpu.core_type<tc>, window_params = [{transform_indices = @transform_0, window_bounds = array<i64: 8, 4>}, {pipeline_mode = #tpu.pipeline_mode<synchronous>, transform_indices = @transform_1, window_bounds = array<i64: 64, 128>}, {transform_indices = @transform_2, window_bounds = array<i64: 8, 128>}]} {
    %c0 = arith.constant 0 : index
    %c0_0 = arith.constant 0 : index
    %0 = vector.load %arg1[%c0, %c0_0] : memref<8x4xi32, #tpu.memory_space<vmem>>, vector<8x4xi32>
    %c0_1 = arith.constant 0 : index
    %c0_2 = arith.constant 0 : index
    %1 = vector.load %arg2[%c0_1, %c0_2] : memref<64x128xf32, #tpu.memory_space<vmem>>, vector<64x128xf32>
    %2 = tpu.iota {dimensions = array<i32: 1>} : vector<8x64xi32>
    %c0_i32 = arith.constant 0 : i32
    %3 = vector.broadcast %c0_i32 : i32 to vector<8x4xi32>
    %4 = arith.shrsi %0, %3 : vector<8x4xi32>
    %c1023_i32 = arith.constant 1023 : i32
    %5 = vector.broadcast %c1023_i32 : i32 to vector<8x4xi32>
    %6 = arith.andi %4, %5 : vector<8x4xi32>
    %7 = vector.extract_strided_slice %6 {offsets = [0, 0], sizes = [8, 1], strides = [1, 1]} : vector<8x4xi32> to vector<8x1xi32>
    %8 = vector.broadcast %7 : vector<8x1xi32> to vector<8x64xi32>
    %9 = arith.cmpi eq, %2, %8 : vector<8x64xi32>
    %10 = vector.extract_strided_slice %6 {offsets = [0, 1], sizes = [8, 1], strides = [1, 1]} : vector<8x4xi32> to vector<8x1xi32>
    %11 = vector.broadcast %10 : vector<8x1xi32> to vector<8x64xi32>
    %12 = arith.cmpi eq, %2, %11 : vector<8x64xi32>
    %13 = arith.ori %9, %12 : vector<8x64xi1>
    %14 = vector.extract_strided_slice %6 {offsets = [0, 2], sizes = [8, 1], strides = [1, 1]} : vector<8x4xi32> to vector<8x1xi32>
    %15 = vector.broadcast %14 : vector<8x1xi32> to vector<8x64xi32>
    %16 = arith.cmpi eq, %2, %15 : vector<8x64xi32>
    %17 = arith.ori %13, %16 : vector<8x64xi1>
    %18 = vector.extract_strided_slice %6 {offsets = [0, 3], sizes = [8, 1], strides = [1, 1]} : vector<8x4xi32> to vector<8x1xi32>
    %19 = vector.broadcast %18 : vector<8x1xi32> to vector<8x64xi32>
    %20 = arith.cmpi eq, %2, %19 : vector<8x64xi32>
    %21 = arith.ori %17, %20 : vector<8x64xi1>
    %c10_i32 = arith.constant 10 : i32
    %22 = vector.broadcast %c10_i32 : i32 to vector<8x4xi32>
    %23 = arith.shrsi %0, %22 : vector<8x4xi32>
    %c1023_i32_3 = arith.constant 1023 : i32
    %24 = vector.broadcast %c1023_i32_3 : i32 to vector<8x4xi32>
    %25 = arith.andi %23, %24 : vector<8x4xi32>
    %26 = vector.extract_strided_slice %25 {offsets = [0, 0], sizes = [8, 1], strides = [1, 1]} : vector<8x4xi32> to vector<8x1xi32>
    %27 = vector.broadcast %26 : vector<8x1xi32> to vector<8x64xi32>
    %28 = arith.cmpi eq, %2, %27 : vector<8x64xi32>
    %29 = arith.ori %21, %28 : vector<8x64xi1>
    %30 = vector.extract_strided_slice %25 {offsets = [0, 1], sizes = [8, 1], strides = [1, 1]} : vector<8x4xi32> to vector<8x1xi32>
    %31 = vector.broadcast %30 : vector<8x1xi32> to vector<8x64xi32>
    %32 = arith.cmpi eq, %2, %31 : vector<8x64xi32>
    %33 = arith.ori %29, %32 : vector<8x64xi1>
    %34 = vector.extract_strided_slice %25 {offsets = [0, 2], sizes = [8, 1], strides = [1, 1]} : vector<8x4xi32> to vector<8x1xi32>
    %35 = vector.broadcast %34 : vector<8x1xi32> to vector<8x64xi32>
    %36 = arith.cmpi eq, %2, %35 : vector<8x64xi32>
    %37 = arith.ori %33, %36 : vector<8x64xi1>
    %38 = vector.extract_strided_slice %25 {offsets = [0, 3], sizes = [8, 1], strides = [1, 1]} : vector<8x4xi32> to vector<8x1xi32>
    %39 = vector.broadcast %38 : vector<8x1xi32> to vector<8x64xi32>
    %40 = arith.cmpi eq, %2, %39 : vector<8x64xi32>
    %41 = arith.ori %37, %40 : vector<8x64xi1>
    %c20_i32 = arith.constant 20 : i32
    %42 = vector.broadcast %c20_i32 : i32 to vector<8x4xi32>
    %43 = arith.shrsi %0, %42 : vector<8x4xi32>
    %c1023_i32_4 = arith.constant 1023 : i32
    %44 = vector.broadcast %c1023_i32_4 : i32 to vector<8x4xi32>
    %45 = arith.andi %43, %44 : vector<8x4xi32>
    %46 = vector.extract_strided_slice %45 {offsets = [0, 0], sizes = [8, 1], strides = [1, 1]} : vector<8x4xi32> to vector<8x1xi32>
    %47 = vector.broadcast %46 : vector<8x1xi32> to vector<8x64xi32>
    %48 = arith.cmpi eq, %2, %47 : vector<8x64xi32>
    %49 = arith.ori %41, %48 : vector<8x64xi1>
    %50 = vector.extract_strided_slice %45 {offsets = [0, 1], sizes = [8, 1], strides = [1, 1]} : vector<8x4xi32> to vector<8x1xi32>
    %51 = vector.broadcast %50 : vector<8x1xi32> to vector<8x64xi32>
    %52 = arith.cmpi eq, %2, %51 : vector<8x64xi32>
    %53 = arith.ori %49, %52 : vector<8x64xi1>
    %54 = vector.extract_strided_slice %45 {offsets = [0, 2], sizes = [8, 1], strides = [1, 1]} : vector<8x4xi32> to vector<8x1xi32>
    %55 = vector.broadcast %54 : vector<8x1xi32> to vector<8x64xi32>
    %56 = arith.cmpi eq, %2, %55 : vector<8x64xi32>
    %57 = arith.ori %53, %56 : vector<8x64xi1>
    %58 = vector.extract_strided_slice %45 {offsets = [0, 3], sizes = [8, 1], strides = [1, 1]} : vector<8x4xi32> to vector<8x1xi32>
    %59 = vector.broadcast %58 : vector<8x1xi32> to vector<8x64xi32>
    %60 = arith.cmpi eq, %2, %59 : vector<8x64xi32>
    %61 = arith.ori %57, %60 : vector<8x64xi1>
    %62 = arith.extui %61 : vector<8x64xi1> to vector<8x64xi32>
    %63 = arith.sitofp %62 : vector<8x64xi32> to vector<8x64xf32>
    %cst = arith.constant dense<0.000000e+00> : vector<8x128xf32>
    %64 = tpu.matmul %63, %1, %cst {dimension_numbers = #tpu.dot_dimension_numbers<[1], [0], [0], [1], [0, 0, 1, 1], [], []>} : vector<8x64xf32>, vector<64x128xf32>, vector<8x128xf32> -> vector<8x128xf32>
    %c0_5 = arith.constant 0 : index
    %c0_6 = arith.constant 0 : index
    %65 = vector.load %arg3[%c0_5, %c0_6] : memref<8x128xf32, #tpu.memory_space<vmem>>, vector<8x128xf32>
    tpu.vector_store %arg3[%c0_5, %c0_6], %64 {strides = array<i32>} : memref<8x128xf32, #tpu.memory_space<vmem>>, vector<8x128xf32>,
    return
  }
  func.func @transform_0(%arg0: i32) -> (i32, i32) {
    %c0_i32 = arith.constant 0 : i32
    %c0_i32_0 = arith.constant 0 : i32
    return %arg0, %c0_i32 : i32, i32
  }
  func.func @transform_1(%arg0: i32) -> (i32, i32) {
    %c0_i32 = arith.constant 0 : i32
    %c0_i32_0 = arith.constant 0 : i32
    %c0_i32_1 = arith.constant 0 : i32
    return %c0_i32, %c0_i32_0 : i32, i32
  }
  func.func @transform_2(%arg0: i32) -> (i32, i32) {
    %c0_i32 = arith.constant 0 : i32
    %c0_i32_0 = arith.constant 0 : i32
    return %arg0, %c0_i32 : i32, i32
  }
}

</mosaic_0001>

<bundles_post_ra>
// kernel: tpu_custom_call.1
= control target key start
LH: loop header
LB: loop body
LE: loop exit
PB: predicated region body
PF: predicated region fallthrough
CT: control target
= control target key end

     0   :  { %7 = vsyncpa [#allocation3], 0  ;;  %s359_s0 = inlined_call_operand.vmem [shape: s32[8,4], index: 0, kind: input, shape index: {}]   ;;  %s360_s1 = inlined_call_operand.hbm [shape: f32[64,128], index: 1, kind: input, shape index: {}]   ;;  %s361_s2 = inlined_call_operand.hbm [shape: f32[8,128], index: 2, kind: output, shape index: {}]  }
   0x1   :  { %8 = vsyncpa [#allocation4], 0  ;;  %s306_s9 = smov [#allocation2]   ;;  %s258_s13 = scalar_lea.hbm %s360_s1, 1024 }
   0x2   :  { %s16_s10 = sshll.u32 %s306_s9, 4  ;;  %p259_p0 = scmp.ne.s32.totalorder %s360_s1, %s258_s13  ;;  %s17_s10 = int_to_ptr.vmem [resolvable:$true] %s16_s10 }
   0x3   :  { %p262_p1 = scmp.lt.u32.totalorder %s258_s13, %s360_s1 }
   0x5   :  { %p264_p2 = pnand %p262_p1, %p259_p0 }
   0x7   :  { %267 = shalt.err (!%p264_p2)
}
   0x8   :  { %s268_s18 = scalar_lea.vmem %s17_s10, 1024  ;;  %p273_p4 = scmp.lt.s32.totalorder %s17_s10, %s17_s10 }
   0x9   :  { %p269_p3 = scmp.ne.s32.totalorder %s17_s10, %s268_s18  ;;  %p274_p5 = scmp.lt.s32.totalorder %s268_s18, %s268_s18 }
   0xb   :  { %p275_p6 = por %p274_p5, %p273_p4 }
   0xd   :  { %p276_p7 = pnand %p275_p6, %p269_p3 }
   0xf   :  { %279 = shalt.err (!%p276_p7)
}
  0x10   :  { %s307_s19 = smov 128   ;;  %s308_s20 = smov 8  }
  0x11   :  { %22 = dma.hbm_to_vmem [thread:$0]  %s360_s1, 1024, %s17_s10, [#allocation3], %s307_s19, %s307_s19, %s308_s20  }
  0x12   :  { %302 = dma.done.wait [#allocation3], 1024  }
  0x13   :  { %303 = vsyncadd [#allocation3], 4294966272  ;;  %v309_v0 = vmov 2   ;;  %v310_v1 = vmov 0   ;;  %v26_v2 = vld [vmem:[%s359_s0] sm:$0xff]  ;;  %v311_v5 = vmov 3   ;;  %v35_v26 = vlaneseq }
  0x14   :  { %248 = vset.pattern.permute.xlu1 %v309_v0  ;;  %246 = vset.pattern.permute.xlu0 %v310_v1  ;;  %v37_v3 = vand.u32 1023, %v26_v2  ;;  %v57_v4 = vshra.s32 %v26_v2, 10  ;;  %v312_v6 = vmov 1   ;;  %v79_v8 = vshra.s32 %v26_v2, 20  ;;  %v27_v9 = vld [vmem:[#allocation2] sm:$0xff]  ;;  %v28_v10 = vld [vmem:[#allocation2 + $0x8] sm:$0xff] }
  0x15   :  { %v224_v12 = vpack.c.bf16 %v28_v10, %v27_v9  ;;  %v313_v13 = vmov 0.0|0.0   ;;  %v29_v14 = vld [vmem:[#allocation2 + $0x10] sm:$0xff]  ;;  %v30_v15 = vld [vmem:[#allocation2 + $0x18] sm:$0xff]  ;;  %v31_v17 = vld [vmem:[#allocation2 + $0x20] sm:$0xff]  ;;  %vm314_vm0 = vmmov 0   ;;  %v315_v23 = vmov 0.0  }
  0x16   :  { %48 = vperm.xlu1 %248, %v37_v3   ;;  %39 = vperm.xlu0 %246, %v37_v3   ;;  %v58_v7 = vand.u32 1023, %v57_v4  ;;  %v80_v11 = vand.u32 1023, %v79_v8  ;;  %v227_v16 = vpack.c.bf16 %v30_v15, %v29_v14  ;;  %v32_v18 = vld [vmem:[#allocation2 + $0x28] sm:$0xff]  ;;  %v33_v20 = vld [vmem:[#allocation2 + $0x30] sm:$0xff]  ;;  %v34_v21 = vld [vmem:[#allocation2 + $0x38] sm:$0xff]  ;;  %v36_v29 = vand.u32 127, %v35_v26 }
  0x17   :  { %223 = vmatprep.subr.bf16.mxu0 %v313_v13  ;;  %v230_v19 = vpack.c.bf16 %v32_v18, %v31_v17  ;;  %v233_v22 = vpack.c.bf16 %v34_v21, %v33_v20  ;;  %220 = vmatprep.mubr.msk.f32.mxu0 %vm314_vm0, %v315_v23  ;;  %s316_s0 = smov [#allocation5]  }
  0x18   :  { %225 = vmatpush3.bf16.msra.mxu0 %v224_v12  ;;  %s184_s1 = sshll.u32 %s316_s0, 4  ;;  %s185_s1 = int_to_ptr.vmem [resolvable:$true] %s184_s1 }
  0x19   :  { %226 = vmatprep.subr.bf16.mxu0 %v313_v13  ;;  %s280_s25 = scalar_lea.vmem %s185_s1, 128  ;;  %p285_p9 = scmp.lt.s32.totalorder %s185_s1, %s185_s1 }
  0x1a   :  { %249 = vset.pattern.permute.xlu1 %v311_v5  ;;  %247 = vset.pattern.permute.xlu0 %v312_v6  ;;  %p281_p8 = scmp.ne.s32.totalorder %s185_s1, %s280_s25  ;;  %p286_p10 = scmp.lt.s32.totalorder %s280_s25, %s280_s25 }
  0x1b   :  { %53 = vperm.xlu1 %249, %v37_v3   ;;  %43 = vperm.xlu0 %247, %v37_v3  }
  0x1c   :  { %228 = vmatpush3.bf16.msra.mxu0 %v227_v16  ;;  %p287_p11 = por %p286_p10, %p285_p9 }
  0x1d   :  { %229 = vmatprep.subr.bf16.mxu0 %v313_v13 }
  0x1e   :  { %p288_p12 = pnand %p287_p11, %p281_p8 }
  0x1f   :  { %250 = vset.pattern.permute.xlu1 %v310_v1  ;;  %65 = vperm.xlu0 %247, %v58_v7  }
  0x20   :  { %60 = vperm.xlu1 %250, %v58_v7   ;;  %231 = vmatpush3.bf16.msra.mxu0 %v230_v19 }
  0x21   :  { %232 = vmatprep.subr.bf16.mxu0 %v313_v13 }
  0x23   :  { %252 = vset.pattern.permute.xlu0 %v311_v5 }
  0x24   :  { %251 = vset.pattern.permute.xlu1 %v309_v0  ;;  %75 = vperm.xlu0 %252, %v58_v7  }
  0x25   :  { %70 = vperm.xlu1 %251, %v58_v7   ;;  %234 = vmatpush3.bf16.msra.mxu0 %v233_v22 }
  0x28   :  { %255 = vset.pattern.permute.xlu0 %v309_v0 }
  0x29   :  { %253 = vset.pattern.permute.xlu1 %v310_v1  ;;  %92 = vperm.xlu0 %255, %v80_v11  }
  0x2a   :  { %82 = vperm.xlu1 %253, %v80_v11  }
  0x2d   :  { %257 = vset.pattern.permute.xlu0 %v311_v5 }
  0x2e   :  { %254 = vset.pattern.permute.xlu1 %v312_v6 }
  0x2f   :  { %87 = vperm.xlu1 %254, %v80_v11  }
  0x33   :  { %256 = vset.pattern.permute.xlu1 %v311_v5 }
  0x34   :  { %97 = vperm.xlu1 %256, %v80_v11  }
  0x95   :  { %v49_v24 = vpop.permute.xlu1 %48  ;;  %v40_v25 = vpop.permute.xlu0 %39 }
  0x96   :  { %vm41_vm1 = vcmp.eq.s32.totalorder %v36_v29, %v40_v25  ;;  %vm50_vm4 = vcmp.eq.s32.totalorder %v36_v29, %v49_v24 }
  0x9a   :  { %v54_v27 = vpop.permute.xlu1 %53  ;;  %v44_v28 = vpop.permute.xlu0 %43 }
  0x9b   :  { %vm45_vm2 = vcmp.eq.s32.totalorder %v36_v29, %v44_v28  ;;  %vm55_vm7 = vcmp.eq.s32.totalorder %v36_v29, %v54_v27 }
  0x9c   :  { %vm46_vm3 = vmor %vm41_vm1, %vm45_vm2 }
  0x9d   :  { %vm51_vm5 = vmor %vm46_vm3, %vm50_vm4 }
  0x9e   :  { %v66_v31 = vpop.permute.xlu0 %65  ;;  %vm56_vm8 = vmor %vm51_vm5, %vm55_vm7 }
  0x9f   :  { %v61_v30 = vpop.permute.xlu1 %60  ;;  %vm67_vm10 = vcmp.eq.s32.totalorder %v36_v29, %v66_v31 }
  0xa0   :  { %vm62_vm6 = vcmp.eq.s32.totalorder %v36_v29, %v61_v30 }
  0xa1   :  { %vm63_vm9 = vmor %vm56_vm8, %vm62_vm6  ;;  %vm103_vm6 = vcmask 523264  }
  0xa2   :  { %vm68_vm12 = vmor %vm63_vm9, %vm67_vm10 }
  0xa3   :  { %v76_v33 = vpop.permute.xlu0 %75 }
  0xa4   :  { %v71_v32 = vpop.permute.xlu1 %70  ;;  %vm77_vm14 = vcmp.eq.s32.totalorder %v36_v29, %v76_v33 }
  0xa5   :  { %vm72_vm11 = vcmp.eq.s32.totalorder %v36_v29, %v71_v32 }
  0xa6   :  { %vm73_vm13 = vmor %vm68_vm12, %vm72_vm11 }
  0xa7   :  { %vm78_vm0 = vmor %vm73_vm13, %vm77_vm14 }
  0xa8   :  { %v93_v36 = vpop.permute.xlu0 %92 }
  0xa9   :  { %v83_v34 = vpop.permute.xlu1 %82  ;;  %vm94_vm4 = vcmp.eq.s32.totalorder %v36_v29, %v93_v36 }
  0xaa   :  { %vm84_vm15 = vcmp.eq.s32.totalorder %v36_v29, %v83_v34 }
  0xab   :  { %vm85_vm2 = vmor %vm78_vm0, %vm84_vm15 }
  0xae   :  { %v88_v35 = vpop.permute.xlu1 %87 }
  0xaf   :  { %vm89_vm1 = vcmp.eq.s32.totalorder %v36_v29, %v88_v35 }
  0xb0   :  { %vm90_vm3 = vmor %vm85_vm2, %vm89_vm1 }
  0xb1   :  { %vm95_vm5 = vmor %vm90_vm3, %vm94_vm4 }
  0xb3   :  { %v98_v37 = vpop.permute.xlu1 %97 }
  0xb4   :  { %vm99_vm7 = vcmp.eq.s32.totalorder %v36_v29, %v98_v37 }
  0xb5   :  { %vm100_vm8 = vmor %vm95_vm5, %vm99_vm7 }
  0xb6   :  { %v193_v38 = vsel %vm100_vm8, 1.0, %v315_v23 }
  0xb7   :  { %221 = vmatmul.mubr.msk.f32.vlgmr.msra.gmra.mrb[0].mxu0 %vm103_vm6, %v193_v38 }
 0x18a   :  { %v173_v39 = vpop.f32.mrb[0].mxu0 }
 0x18b   :  { %177 = vst [vmem:[#allocation5] sm:$0xff] %v173_v39  ;;  %v222_v40 = vpop.f32.mrb[1].mxu0 }
 0x18c   :  { %291 = shalt.err (!%p288_p12)
}
 0x18d   :  { %s292_s28 = scalar_lea.hbm %s361_s2, 128 }
 0x18e   :  { %p293_p13 = scmp.ne.s32.totalorder %s361_s2, %s292_s28  ;;  %p296_p0 = scmp.lt.u32.totalorder %s292_s28, %s361_s2 }
 0x190   :  { %p298_p1 = pnand %p296_p0, %p293_p13 }
 0x192   :  { %301 = shalt.err (!%p298_p1)
}
 0x193   :  { %187 = dma.vmem_to_hbm [thread:$0]  %s185_s1, 128, %s361_s2, [#allocation4]  }
 0x194   :  { %304 = dma.done.wait [#allocation4], 128  }
 0x195   :  { %305 = vsyncadd [#allocation4], 4294967168 }
 0x196   :  { %191 = vsyncpa [#allocation3], 1 }
 0x197   :  { %192 = vsyncpa [#allocation4], 1 }

</bundles_post_ra>
